<compile_context>
chip_gen: v7x
topology: tpu7x:2x2x1
jax: 0.10.0
libtpu: 0.0.40
codegen_flags: <defaults>
</compile_context>

<pallas_src>
import functools

import jax
import jax.numpy as jnp
from jax.experimental import pallas as pl

EPS = 1e-5
LANE = 128

H1, H2, H3 = 64, 32, 16   # hidden sizes (fixed by the module defaults)

# 128-lane-aligned column offsets inside the packed slabs.
W1_OFF, W2_OFF, W3_OFF, W4_OFF = 0, 128, 256, 384            # w_slab (64, 512)
(B1_OFF, G1_OFF, BE1_OFF,
 B2_OFF, G2_OFF, BE2_OFF,
 B3_OFF, G3_OFF, BE3_OFF,
 B4_OFF) = (0, 128, 256, 384, 512, 640, 768, 896, 1024, 1152)  # vec_slab (1, 1280)


def _bn(h, gamma, beta, inv_n, mask):
    """Training-mode BatchNorm1d, one-pass (sum, sumsq) stats, folded affine.

    Padded rows (mask == 0) are excluded from the statistics; `inv_n` is
    1 / true_batch_size, giving the biased variance PyTorch uses in training.
    The affine transform is folded into a single scale/shift so the apply
    step is 2 VPU ops per element instead of 4.
    """
    hm = h * mask if mask is not None else h
    s = jnp.sum(hm, axis=0, keepdims=True)
    ss = jnp.sum(hm * hm, axis=0, keepdims=True)
    mean = s * inv_n
    var = jnp.maximum(ss * inv_n - mean * mean, 0.0)
    scale = gamma * jax.lax.rsqrt(var + EPS)
    shift = beta - mean * scale
    return h * scale + shift


def net_kernel(x_ref, w_ref, v_ref, out_ref, *, n_true, n_pad):
    x = x_ref[...]                                                # (Npad, 1)

    # Static, 128-lane-aligned views into the packed weight slab (64, 512).
    w1 = w_ref[0:1, W1_OFF:W1_OFF + H1]        # shared_layer1      (1, 64)
    w2 = w_ref[:, W2_OFF:W2_OFF + H2]          # shared_layer2      (64, 32)
    w3 = w_ref[0:H2, W3_OFF:W3_OFF + 2 * H3]   # fused branch L1    (32, 32)
    w4 = w_ref[0:2 * H3, W4_OFF:W4_OFF + 2]    # block-diag heads   (32, 2)

    # Static, 128-lane-aligned views into the packed vector slab (1, 1280).
    b1 = v_ref[:, B1_OFF:B1_OFF + H1]
    g1 = v_ref[:, G1_OFF:G1_OFF + H1]
    be1 = v_ref[:, BE1_OFF:BE1_OFF + H1]
    b2 = v_ref[:, B2_OFF:B2_OFF + H2]
    g2 = v_ref[:, G2_OFF:G2_OFF + H2]
    be2 = v_ref[:, BE2_OFF:BE2_OFF + H2]
    b3 = v_ref[:, B3_OFF:B3_OFF + 2 * H3]
    g3 = v_ref[:, G3_OFF:G3_OFF + 2 * H3]
    be3 = v_ref[:, BE3_OFF:BE3_OFF + 2 * H3]
    b4 = v_ref[:, B4_OFF:B4_OFF + 2]

    inv_n = 1.0 / float(max(n_true, 1))
    if n_true != n_pad:
        row_ids = jax.lax.broadcasted_iota(jnp.int32, (n_pad, 1), 0)
        mask = (row_ids < n_true).astype(jnp.float32)
    else:
        mask = None

    # Layer 1: K=1 contraction done as a VPU broadcast multiply-add.
    h = jnp.maximum(x * w1 + b1, 0.0)                             # (Npad, 64)
    h = _bn(h, g1, be1, inv_n, mask)

    # Layer 2 (MXU).
    h = jnp.dot(h, w2, preferred_element_type=jnp.float32) + b2   # (Npad, 32)
    h = jnp.maximum(h, 0.0)
    h = _bn(h, g2, be2, inv_n, mask)

    # Fused x/y branch layer (one matmul + one BN over disjoint column groups).
    h = jnp.dot(h, w3, preferred_element_type=jnp.float32) + b3   # (Npad, 32)
    h = jnp.maximum(h, 0.0)
    h = _bn(h, g3, be3, inv_n, mask)

    # Block-diagonal final projection writes out_ref directly: col 0 = out_x,
    # col 1 = out_y (replaces two (N,16)@(16,1) matmuls + concat).
    out_ref[...] = jnp.dot(h, w4, preferred_element_type=jnp.float32) + b4


def _pad_block(w, rows=H1):
    """Pad a weight block to `rows` sublanes and a 128-lane-multiple width."""
    r, c = w.shape
    return jnp.pad(w, ((0, rows - r), (0, (-c) % LANE)))


def _pad_vec(v):
    """Pad a (1, C) vector to a 128-lane-multiple width."""
    return jnp.pad(v, ((0, 0), (0, (-v.shape[1]) % LANE)))


def pack_params(params):
    """Pack the 20 per-layer tensors into lane-aligned (weight, vector) slabs."""
    (w1, b1, g1, be1,
     w2, b2, g2, be2,
     w3x, b3x, g3x, be3x,
     w3y, b3y, g3y, be3y,
     w4x, b4x,
     w4y, b4y) = params

    # Fuse the x/y branch layer.
    w3 = jnp.concatenate([w3x, w3y], axis=1)          # (32, 32)
    b3 = jnp.concatenate([b3x, b3y], axis=1)          # (1, 32)
    g3 = jnp.concatenate([g3x, g3y], axis=1)
    be3 = jnp.concatenate([be3x, be3y], axis=1)

    # Block-diagonal head weight: rows 0:16 -> col 0 (x), rows 16:32 -> col 1 (y).
    z = jnp.zeros((H3, 1), jnp.float32)
    w4 = jnp.concatenate(
        [jnp.concatenate([w4x, z], axis=1),
         jnp.concatenate([z, w4y], axis=1)], axis=0)  # (32, 2)
    b4 = jnp.concatenate([b4x, b4y], axis=1)          # (1, 2)

    w_slab = jnp.concatenate(
        [_pad_block(w1), _pad_block(w2), _pad_block(w3), _pad_block(w4)],
        axis=1).astype(jnp.float32)                   # (64, 512)

    vec_slab = jnp.concatenate(
        [_pad_vec(v) for v in (b1, g1, be1, b2, g2, be2, b3, g3, be3, b4)],
        axis=1).astype(jnp.float32)                   # (1, 1280)

    return w_slab, vec_slab


def net_forward(x, packed):
    """x: any shape with N total elements (torch semantics: reshape(-1, 1))."""
    w_slab, vec_slab = packed
    x2d = x.reshape(-1, 1).astype(jnp.float32)
    n = x2d.shape[0]
    n_pad = max(8, ((n + 7) // 8) * 8)       # keep the sublane dim unmasked
    if n_pad != n:
        x2d = jnp.pad(x2d, ((0, n_pad - n), (0, 0)))

    kernel = functools.partial(net_kernel, n_true=n, n_pad=n_pad)

    out = pl.pallas_call(
        kernel,
        out_shape=jax.ShapeDtypeStruct((n_pad, 2), jnp.float32),
        grid=(),
        in_specs=[
            pl.BlockSpec(x2d.shape, lambda: (0, 0)),
            pl.BlockSpec(w_slab.shape, lambda: (0, 0)),
            pl.BlockSpec(vec_slab.shape, lambda: (0, 0)),
        ],
        out_specs=pl.BlockSpec((n_pad, 2), lambda: (0, 0)),
    )(x2d, w_slab, vec_slab)

    return out[:n]


def init_params(key, input_size=1, h1=H1, h2=H2, h3=H3, output_size=1):
    """Deterministic parameter init (uniform, PyTorch-Linear-style bounds)."""
    def linear(key, fan_in, fan_out):
        kw, kb = jax.random.split(key)
        bound = 1.0 / jnp.sqrt(float(fan_in))
        w = jax.random.uniform(kw, (fan_in, fan_out), jnp.float32, -bound, bound)
        b = jax.random.uniform(kb, (1, fan_out), jnp.float32, -bound, bound)
        return w, b

    def bn(dim):
        return jnp.ones((1, dim), jnp.float32), jnp.zeros((1, dim), jnp.float32)

    keys = jax.random.split(key, 6)
    w1, b1 = linear(keys[0], input_size, h1)
    w2, b2 = linear(keys[1], h1, h2)
    w3x, b3x = linear(keys[2], h2, h3)
    w3y, b3y = linear(keys[3], h2, h3)
    w4x, b4x = linear(keys[4], h3, output_size)
    w4y, b4y = linear(keys[5], h3, output_size)
    g1, be1 = bn(h1)
    g2, be2 = bn(h2)
    g3x, be3x = bn(h3)
    g3y, be3y = bn(h3)

    return (
        w1, b1, g1, be1,
        w2, b2, g2, be2,
        w3x, b3x, g3x, be3x,
        w3y, b3y, g3y, be3y,
        w4x, b4x,
        w4y, b4y,
    )


def net_reference(x, params):
    """Pure-JAX reference of the PyTorch forward (training-mode BN)."""
    (w1, b1, g1, be1,
     w2, b2, g2, be2,
     w3x, b3x, g3x, be3x,
     w3y, b3y, g3y, be3y,
     w4x, b4x,
     w4y, b4y) = params

    def bn(h, g, b):
        mean = jnp.mean(h, axis=0, keepdims=True)
        var = jnp.mean((h - mean) ** 2, axis=0, keepdims=True)
        return g * (h - mean) / jnp.sqrt(var + EPS) + b

    h = x.reshape(-1, 1).astype(jnp.float32)
    h = bn(jnp.maximum(h @ w1 + b1, 0.0), g1, be1)
    h = bn(jnp.maximum(h @ w2 + b2, 0.0), g2, be2)
    hx = bn(jnp.maximum(h @ w3x + b3x, 0.0), g3x, be3x)
    hy = bn(jnp.maximum(h @ w3y + b3y, 0.0), g3y, be3y)
    return jnp.concatenate([hx @ w4x + b4x, hy @ w4y + b4y], axis=1)


if __name__ == "__main__":
    key = jax.random.PRNGKey(0)
    k_param, k_x = jax.random.split(key)

    params = init_params(k_param)
    packed = pack_params(params)

    # Scalar time inputs: batch of 16 scalars -> reshaped to (16, 1) inside.
    x = jax.random.normal(k_x, (16,), dtype=jnp.float32)

    out = net_forward(x, packed)
    out = jax.block_until_ready(out)
    assert out.shape == (16, 2), out.shape
    assert bool(jnp.all(jnp.isfinite(out)))

    ref = net_reference(x, params)
    assert bool(jnp.allclose(out, ref, atol=1e-3, rtol=1e-3)), (
        float(jnp.max(jnp.abs(out - ref))))
    print("KERNEL_OK")
</pallas_src>

<mosaic_0001>
module attributes {stable_mosaic.version = 11 : i64} {
  func.func @net_kernel(%arg0: memref<16x1xf32, #tpu.memory_space<vmem>>, %arg1: memref<64x512xf32, #tpu.memory_space<vmem>>, %arg2: memref<1x1280xf32, #tpu.memory_space<vmem>>, %arg3: memref<16x2xf32, #tpu.memory_space<vmem>>) attributes {dimension_semantics = [], scalar_prefetch = 0 : i64, scratch_operands = 0 : i64, tpu.core_type = #tpu.core_type<tc>} {
    %c0 = arith.constant 0 : index
    %c0_0 = arith.constant 0 : index
    %0 = vector.load %arg0[%c0, %c0_0] : memref<16x1xf32, #tpu.memory_space<vmem>>, vector<16x1xf32>
    %c0_1 = arith.constant 0 : index
    %c0_2 = arith.constant 0 : index
    %1 = vector.load %arg1[%c0_1, %c0_2] : memref<64x512xf32, #tpu.memory_space<vmem>>, vector<1x64xf32>
    %c0_3 = arith.constant 0 : index
    %c128 = arith.constant 128 : index
    %2 = vector.load %arg1[%c0_3, %c128] : memref<64x512xf32, #tpu.memory_space<vmem>>, vector<64x32xf32>
    %c0_4 = arith.constant 0 : index
    %c256 = arith.constant 256 : index
    %3 = vector.load %arg1[%c0_4, %c256] : memref<64x512xf32, #tpu.memory_space<vmem>>, vector<32x32xf32>
    %c0_5 = arith.constant 0 : index
    %c384 = arith.constant 384 : index
    %4 = vector.load %arg1[%c0_5, %c384] : memref<64x512xf32, #tpu.memory_space<vmem>>, vector<32x2xf32>
    %c0_6 = arith.constant 0 : index
    %c0_7 = arith.constant 0 : index
    %5 = vector.load %arg2[%c0_6, %c0_7] : memref<1x1280xf32, #tpu.memory_space<vmem>>, vector<1x64xf32>
    %c0_8 = arith.constant 0 : index
    %c128_9 = arith.constant 128 : index
    %6 = vector.load %arg2[%c0_8, %c128_9] : memref<1x1280xf32, #tpu.memory_space<vmem>>, vector<1x64xf32>
    %c0_10 = arith.constant 0 : index
    %c256_11 = arith.constant 256 : index
    %7 = vector.load %arg2[%c0_10, %c256_11] : memref<1x1280xf32, #tpu.memory_space<vmem>>, vector<1x64xf32>
    %c0_12 = arith.constant 0 : index
    %c384_13 = arith.constant 384 : index
    %8 = vector.load %arg2[%c0_12, %c384_13] : memref<1x1280xf32, #tpu.memory_space<vmem>>, vector<1x32xf32>
    %c0_14 = arith.constant 0 : index
    %c512 = arith.constant 512 : index
    %9 = vector.load %arg2[%c0_14, %c512] : memref<1x1280xf32, #tpu.memory_space<vmem>>, vector<1x32xf32>
    %c0_15 = arith.constant 0 : index
    %c640 = arith.constant 640 : index
    %10 = vector.load %arg2[%c0_15, %c640] : memref<1x1280xf32, #tpu.memory_space<vmem>>, vector<1x32xf32>
    %c0_16 = arith.constant 0 : index
    %c768 = arith.constant 768 : index
    %11 = vector.load %arg2[%c0_16, %c768] : memref<1x1280xf32, #tpu.memory_space<vmem>>, vector<1x32xf32>
    %c0_17 = arith.constant 0 : index
    %c896 = arith.constant 896 : index
    %12 = vector.load %arg2[%c0_17, %c896] : memref<1x1280xf32, #tpu.memory_space<vmem>>, vector<1x32xf32>
    %c0_18 = arith.constant 0 : index
    %c1024 = arith.constant 1024 : index
    %13 = vector.load %arg2[%c0_18, %c1024] : memref<1x1280xf32, #tpu.memory_space<vmem>>, vector<1x32xf32>
    %c0_19 = arith.constant 0 : index
    %c1152 = arith.constant 1152 : index
    %14 = vector.load %arg2[%c0_19, %c1152] : memref<1x1280xf32, #tpu.memory_space<vmem>>, vector<1x2xf32>
    %15 = vector.broadcast %0 : vector<16x1xf32> to vector<16x64xf32>
    %16 = vector.broadcast %1 : vector<1x64xf32> to vector<16x64xf32>
    %17 = arith.mulf %15, %16 : vector<16x64xf32>
    %18 = vector.broadcast %5 : vector<1x64xf32> to vector<16x64xf32>
    %19 = arith.addf %17, %18 : vector<16x64xf32>
    %cst = arith.constant 0.000000e+00 : f32
    %20 = vector.broadcast %cst : f32 to vector<16x64xf32>
    %21 = arith.maximumf %19, %20 : vector<16x64xf32>
    %cst_20 = arith.constant dense<0.000000e+00> : vector<64xf32>
    %22 = vector.multi_reduction <add>, %21, %cst_20 [0] : vector<16x64xf32> to vector<64xf32>
    %23 = vector.shape_cast %22 : vector<64xf32> to vector<1x64xf32>
    %24 = arith.mulf %21, %21 : vector<16x64xf32>
    %cst_21 = arith.constant dense<0.000000e+00> : vector<64xf32>
    %25 = vector.multi_reduction <add>, %24, %cst_21 [0] : vector<16x64xf32> to vector<64xf32>
    %26 = vector.shape_cast %25 : vector<64xf32> to vector<1x64xf32>
    %cst_22 = arith.constant 6.250000e-02 : f32
    %27 = vector.broadcast %cst_22 : f32 to vector<1x64xf32>
    %28 = arith.mulf %23, %27 : vector<1x64xf32>
    %cst_23 = arith.constant 6.250000e-02 : f32
    %29 = vector.broadcast %cst_23 : f32 to vector<1x64xf32>
    %30 = arith.mulf %26, %29 : vector<1x64xf32>
    %31 = arith.mulf %28, %28 : vector<1x64xf32>
    %32 = arith.subf %30, %31 : vector<1x64xf32>
    %cst_24 = arith.constant 0.000000e+00 : f32
    %33 = vector.broadcast %cst_24 : f32 to vector<1x64xf32>
    %34 = arith.maximumf %32, %33 : vector<1x64xf32>
    %cst_25 = arith.constant 9.99999974E-6 : f32
    %35 = vector.broadcast %cst_25 : f32 to vector<1x64xf32>
    %36 = arith.addf %34, %35 : vector<1x64xf32>
    %37 = math.rsqrt %36 : vector<1x64xf32>
    %38 = arith.mulf %6, %37 : vector<1x64xf32>
    %39 = arith.mulf %28, %38 : vector<1x64xf32>
    %40 = arith.subf %7, %39 : vector<1x64xf32>
    %41 = vector.broadcast %38 : vector<1x64xf32> to vector<16x64xf32>
    %42 = arith.mulf %21, %41 : vector<16x64xf32>
    %43 = vector.broadcast %40 : vector<1x64xf32> to vector<16x64xf32>
    %44 = arith.addf %42, %43 : vector<16x64xf32>
    %cst_26 = arith.constant dense<0.000000e+00> : vector<16x32xf32>
    %45 = tpu.matmul %44, %2, %cst_26 {dimension_numbers = #tpu.dot_dimension_numbers<[1], [0], [0], [1], [0, 0, 1, 1], [], []>} : vector<16x64xf32>, vector<64x32xf32>, vector<16x32xf32> -> vector<16x32xf32>
    %46 = vector.broadcast %8 : vector<1x32xf32> to vector<16x32xf32>
    %47 = arith.addf %45, %46 : vector<16x32xf32>
    %cst_27 = arith.constant 0.000000e+00 : f32
    %48 = vector.broadcast %cst_27 : f32 to vector<16x32xf32>
    %49 = arith.maximumf %47, %48 : vector<16x32xf32>
    %cst_28 = arith.constant dense<0.000000e+00> : vector<32xf32>
    %50 = vector.multi_reduction <add>, %49, %cst_28 [0] : vector<16x32xf32> to vector<32xf32>
    %51 = vector.shape_cast %50 : vector<32xf32> to vector<1x32xf32>
    %52 = arith.mulf %49, %49 : vector<16x32xf32>
    %cst_29 = arith.constant dense<0.000000e+00> : vector<32xf32>
    %53 = vector.multi_reduction <add>, %52, %cst_29 [0] : vector<16x32xf32> to vector<32xf32>
    %54 = vector.shape_cast %53 : vector<32xf32> to vector<1x32xf32>
    %cst_30 = arith.constant 6.250000e-02 : f32
    %55 = vector.broadcast %cst_30 : f32 to vector<1x32xf32>
    %56 = arith.mulf %51, %55 : vector<1x32xf32>
    %cst_31 = arith.constant 6.250000e-02 : f32
    %57 = vector.broadcast %cst_31 : f32 to vector<1x32xf32>
    %58 = arith.mulf %54, %57 : vector<1x32xf32>
    %59 = arith.mulf %56, %56 : vector<1x32xf32>
    %60 = arith.subf %58, %59 : vector<1x32xf32>
    %cst_32 = arith.constant 0.000000e+00 : f32
    %61 = vector.broadcast %cst_32 : f32 to vector<1x32xf32>
    %62 = arith.maximumf %60, %61 : vector<1x32xf32>
    %cst_33 = arith.constant 9.99999974E-6 : f32
    %63 = vector.broadcast %cst_33 : f32 to vector<1x32xf32>
    %64 = arith.addf %62, %63 : vector<1x32xf32>
    %65 = math.rsqrt %64 : vector<1x32xf32>
    %66 = arith.mulf %9, %65 : vector<1x32xf32>
    %67 = arith.mulf %56, %66 : vector<1x32xf32>
    %68 = arith.subf %10, %67 : vector<1x32xf32>
    %69 = vector.broadcast %66 : vector<1x32xf32> to vector<16x32xf32>
    %70 = arith.mulf %49, %69 : vector<16x32xf32>
    %71 = vector.broadcast %68 : vector<1x32xf32> to vector<16x32xf32>
    %72 = arith.addf %70, %71 : vector<16x32xf32>
    %cst_34 = arith.constant dense<0.000000e+00> : vector<16x32xf32>
    %73 = tpu.matmul %72, %3, %cst_34 {dimension_numbers = #tpu.dot_dimension_numbers<[1], [0], [0], [1], [0, 0, 1, 1], [], []>} : vector<16x32xf32>, vector<32x32xf32>, vector<16x32xf32> -> vector<16x32xf32>
    %74 = vector.broadcast %11 : vector<1x32xf32> to vector<16x32xf32>
    %75 = arith.addf %73, %74 : vector<16x32xf32>
    %cst_35 = arith.constant 0.000000e+00 : f32
    %76 = vector.broadcast %cst_35 : f32 to vector<16x32xf32>
    %77 = arith.maximumf %75, %76 : vector<16x32xf32>
    %cst_36 = arith.constant dense<0.000000e+00> : vector<32xf32>
    %78 = vector.multi_reduction <add>, %77, %cst_36 [0] : vector<16x32xf32> to vector<32xf32>
    %79 = vector.shape_cast %78 : vector<32xf32> to vector<1x32xf32>
    %80 = arith.mulf %77, %77 : vector<16x32xf32>
    %cst_37 = arith.constant dense<0.000000e+00> : vector<32xf32>
    %81 = vector.multi_reduction <add>, %80, %cst_37 [0] : vector<16x32xf32> to vector<32xf32>
    %82 = vector.shape_cast %81 : vector<32xf32> to vector<1x32xf32>
    %cst_38 = arith.constant 6.250000e-02 : f32
    %83 = vector.broadcast %cst_38 : f32 to vector<1x32xf32>
    %84 = arith.mulf %79, %83 : vector<1x32xf32>
    %cst_39 = arith.constant 6.250000e-02 : f32
    %85 = vector.broadcast %cst_39 : f32 to vector<1x32xf32>
    %86 = arith.mulf %82, %85 : vector<1x32xf32>
    %87 = arith.mulf %84, %84 : vector<1x32xf32>
    %88 = arith.subf %86, %87 : vector<1x32xf32>
    %cst_40 = arith.constant 0.000000e+00 : f32
    %89 = vector.broadcast %cst_40 : f32 to vector<1x32xf32>
    %90 = arith.maximumf %88, %89 : vector<1x32xf32>
    %cst_41 = arith.constant 9.99999974E-6 : f32
    %91 = vector.broadcast %cst_41 : f32 to vector<1x32xf32>
    %92 = arith.addf %90, %91 : vector<1x32xf32>
    %93 = math.rsqrt %92 : vector<1x32xf32>
    %94 = arith.mulf %12, %93 : vector<1x32xf32>
    %95 = arith.mulf %84, %94 : vector<1x32xf32>
    %96 = arith.subf %13, %95 : vector<1x32xf32>
    %97 = vector.broadcast %94 : vector<1x32xf32> to vector<16x32xf32>
    %98 = arith.mulf %77, %97 : vector<16x32xf32>
    %99 = vector.broadcast %96 : vector<1x32xf32> to vector<16x32xf32>
    %100 = arith.addf %98, %99 : vector<16x32xf32>
    %cst_42 = arith.constant dense<0.000000e+00> : vector<16x2xf32>
    %101 = tpu.matmul %100, %4, %cst_42 {dimension_numbers = #tpu.dot_dimension_numbers<[1], [0], [0], [1], [0, 0, 1, 1], [], []>} : vector<16x32xf32>, vector<32x2xf32>, vector<16x2xf32> -> vector<16x2xf32>
    %102 = vector.broadcast %14 : vector<1x2xf32> to vector<16x2xf32>
    %103 = arith.addf %101, %102 : vector<16x2xf32>
    %c0_43 = arith.constant 0 : index
    %c0_44 = arith.constant 0 : index
    %104 = vector.load %arg3[%c0_43, %c0_44] : memref<16x2xf32, #tpu.memory_space<vmem>>, vector<16x2xf32>
    tpu.vector_store %arg3[%c0_43, %c0_44], %103 {strides = array<i32>} : memref<16x2xf32, #tpu.memory_space<vmem>>, vector<16x2xf32>,
    return
  }
}

</mosaic_0001>

<bundles_post_ra>
// kernel: tpu_custom_call.1
= control target key start
LH: loop header
LB: loop body
LE: loop exit
PB: predicated region body
PF: predicated region fallthrough
CT: control target
= control target key end

     0   :  { %8 = vsyncpa [#allocation3], 0  ;;  %s632_s12 = smov [#allocation2]   ;;  %s736_s0 = inlined_call_operand.vmem [shape: f32[16,1], index: 0, kind: input, shape index: {}]   ;;  %s737_s1 = inlined_call_operand.hbm [shape: f32[64,512], index: 1, kind: input, shape index: {}]   ;;  %s738_s2 = inlined_call_operand.vmem [shape: f32[1,1280], index: 2, kind: input, shape index: {}]   ;;  %s739_s3 = inlined_call_operand.vmem [shape: f32[16,2], index: 3, kind: output, shape index: {}]  }
   0x1   :  { %s16_s13 = sshll.u32 %s632_s12, 4  ;;  %s608_s16 = scalar_lea.hbm %s737_s1, 4096  ;;  %s17_s13 = int_to_ptr.vmem [resolvable:$true] %s16_s13 }
   0x2   :  { %p609_p0 = scmp.ne.s32.totalorder %s737_s1, %s608_s16  ;;  %p612_p1 = scmp.lt.u32.totalorder %s608_s16, %s737_s1 }
   0x4   :  { %p614_p2 = pnand %p612_p1, %p609_p0 }
   0x6   :  { %617 = shalt.err (!%p614_p2)
}
   0x7   :  { %s618_s21 = scalar_lea.vmem %s17_s13, 4096  ;;  %p623_p4 = scmp.lt.s32.totalorder %s17_s13, %s17_s13 }
   0x8   :  { %p619_p3 = scmp.ne.s32.totalorder %s17_s13, %s618_s21  ;;  %p624_p5 = scmp.lt.s32.totalorder %s618_s21, %s618_s21 }
   0xa   :  { %p625_p6 = por %p624_p5, %p623_p4 }
   0xc   :  { %p626_p7 = pnand %p625_p6, %p619_p3 }
   0xe   :  { %629 = shalt.err (!%p626_p7)
}
   0xf   :  { %s633_s22 = smov 512   ;;  %s634_s23 = smov 32  }
  0x10   :  { %22 = dma.hbm_to_vmem [thread:$0]  %s737_s1, 4096, %s17_s13, [#allocation3], %s633_s22, %s633_s22, %s634_s23  }
  0x11   :  { %630 = dma.done.wait [#allocation3], 4096  }
  0x12   :  { %631 = vsyncadd [#allocation3], 4294963200  ;;  %v635_v0 = vmov 0   ;;  %v28_v1 = vld [vmem:[%s736_s0] sm:$0xff]  ;;  %v29_v2 = vld [vmem:[%s736_s0 + $0x8] sm:$0xff]  ;;  %vm79_vm0 = vcmask 523264   ;;  %v111_v51 = vlaneseq }
  0x13   :  { %601 = vset.pattern.permute.xlu0 %v635_v0  ;;  %v31_v3 = vld [vmem:[#allocation2 + $0x8] sm:$0xff]  ;;  %v30_v15 = vld [vmem:[#allocation2] ss:$0 sm:$0xff]  ;;  %v48_v53 = vld [vmem:[%s738_s2 + $0x1] sm:$0x1]  ;;  %vm215_vm1 = vcmask 261120  }
  0x14   :  { %59 = vperm.xlu0 %601, %v28_v1   ;;  %v32_v4 = vld [vmem:[#allocation2 + $0x28] sm:$0xff]  ;;  %v492_v16 = vld [vmem:[%s738_s2] ss:$0 sm:$0xff]  ;;  %v112_v52 = vshrl.u32 %v111_v51, 7  ;;  %v49_v57 = vld [vmem:[%s738_s2 + $0x2] sm:$0x1] }
  0x15   :  { %v33_v5 = vld [vmem:[#allocation2 + $0x48] sm:$0xff]  ;;  %v565_v6 = vpack.c.bf16 %v32_v4, %v31_v3  ;;  %v40_v3 = vld [vmem:[#allocation2 + $0x30] sm:$0xff]  ;;  %vm484_vm2 = vcmask 15360  }
  0x16   :  { %v34_v7 = vld [vmem:[#allocation2 + $0x68] sm:$0xff]  ;;  %v684_v54 = vsub.s32 0, %v112_v52  ;;  %v41_v4 = vld [vmem:[#allocation2 + $0x50] sm:$0xff] }
  0x17   :  { %v569_v8 = vpack.c.bf16 %v34_v7, %v33_v5  ;;  %v35_v9 = vld [vmem:[#allocation2 + $0x88] sm:$0xff]  ;;  %566 = vmatprep.subr.bf16.mxu0 %v565_v6 }
  0x18   :  { %64 = vperm.xlu0 %601, %v29_v2   ;;  %v36_v10 = vld [vmem:[#allocation2 + $0xa8] sm:$0xff]  ;;  %568 = vmatpush3.bf16.msra.mxu0 %v565_v6  ;;  %v39_v2 = vld [vmem:[#allocation2 + $0x10] sm:$0xff] }
  0x19   :  { %570 = vmatprep.subr.bf16.mxu0 %v569_v8  ;;  %v573_v11 = vpack.c.bf16 %v36_v10, %v35_v9  ;;  %v37_v12 = vld [vmem:[#allocation2 + $0xc8] sm:$0xff]  ;;  %v581_v5 = vpack.c.bf16 %v40_v3, %v39_v2  ;;  %v42_v6 = vld [vmem:[#allocation2 + $0x70] sm:$0xff] }
  0x1a   :  { %v38_v13 = vld [vmem:[#allocation2 + $0xe8] sm:$0xff]  ;;  %v585_v7 = vpack.c.bf16 %v42_v6, %v41_v4 }
  0x1b   :  { %v577_v14 = vpack.c.bf16 %v38_v13, %v37_v12  ;;  %582 = vmatprep.subr.bf16.mxu1 %v581_v5 }
  0x1c   :  { %572 = vmatpush3.bf16.msra.mxu0 %v569_v8  ;;  %584 = vmatpush3.bf16.msra.mxu1 %v581_v5  ;;  %v493_v8 = vld [vmem:[%s738_s2 + $0x3] ss:$0 sm:$0xff] }
  0x1d   :  { %574 = vmatprep.subr.bf16.mxu0 %v573_v11  ;;  %586 = vmatprep.subr.bf16.mxu1 %v585_v7 }
  0x20   :  { %576 = vmatpush3.bf16.msra.mxu0 %v573_v11  ;;  %588 = vmatpush3.bf16.msra.mxu1 %v585_v7 }
  0x21   :  { %578 = vmatprep.subr.bf16.mxu0 %v577_v14 }
  0x24   :  { %580 = vmatpush3.bf16.msra.mxu0 %v577_v14 }
  0x93   :  { %v60_v17 = vpop.permute.xlu0 %59 }
  0x94   :  { %v67_v18 = vmul.f32 %v60_v17, %v30_v15 }
  0x96   :  { %v75_v19 = vadd.f32 %v492_v16, %v67_v18 }
  0x97   :  { %v65_v20 = vpop.permute.xlu0 %64 }
  0x98   :  { %v77_v21 = vmax.f32 %v75_v19, 0.0  ;;  %v68_v22 = vmul.f32 %v65_v20, %v30_v15 }
  0x9a   :  { %v76_v23 = vadd.f32 %v492_v16, %v68_v22  ;;  %v89_v24 = vmul.f32 %v77_v21, %v77_v21  ;;  %v80_v26 = vsel %vm79_vm0, %v77_v21, 0.0 }
  0x9c   :  { %v78_v25 = vmax.f32 %v76_v23, 0.0  ;;  %v91_v30 = vsel %vm79_vm0, %v89_v24, 0.0 }
  0x9e   :  { %v81_v27 = vsel %vm79_vm0, %v78_v25, 0.0  ;;  %v90_v28 = vmul.f32 %v78_v25, %v78_v25 }
  0x9f   :  { %v82_v29 = vadd.f32 %v81_v27, %v80_v26 }
  0xa0   :  { %v92_v31 = vsel %vm79_vm0, %v90_v28, 0.0 }
  0xa1   :  { %v83_v32 = vrot.slane %v82_v29, 4  ;;  %v93_v33 = vadd.f32 %v92_v31, %v91_v30 }
  0xa3   :  { %v84_v34 = vadd.f32 %v83_v32, %v82_v29  ;;  %v94_v35 = vrot.slane %v93_v33, 4 }
  0xa5   :  { %v85_v36 = vrot.slane %v84_v34, 2  ;;  %v95_v37 = vadd.f32 %v94_v35, %v93_v33 }
  0xa7   :  { %v96_v38 = vrot.slane %v95_v37, 2  ;;  %v86_v39 = vadd.f32 %v85_v36, %v84_v34 }
  0xa9   :  { %v97_v40 = vadd.f32 %v96_v38, %v95_v37  ;;  %v87_v41 = vrot.slane %v86_v39, 1 }
  0xab   :  { %v98_v42 = vrot.slane %v97_v40, 1  ;;  %v88_v43 = vadd.f32 %v87_v41, %v86_v39  ;;  %v51_v41 = vld [vmem:[%s738_s2 + $0x4] sm:$0x1] }
  0xad   :  { %v99_v44 = vadd.f32 %v98_v42, %v97_v40  ;;  %v100_v45 = vmul.f32 0.0625, %v88_v43 }
  0xaf   :  { %v101_v46 = vmul.f32 0.0625, %v99_v44  ;;  %v102_v47 = vmul.f32 %v100_v45, %v100_v45  ;;  %v52_v44 = vld [vmem:[%s738_s2 + $0x5] sm:$0x1] }
  0xb1   :  { %v103_v48 = vsub.f32 %v101_v46, %v102_v47 }
  0xb3   :  { %v104_v49 = vmax.f32 %v103_v48, 0.0 }
  0xb5   :  { %v105_v50 = vadd.f32 1e-05, %v104_v49 }
  0xb7   :  { %602 = vrsqrt.f32 %v105_v50 }
  0xc1   :  { %v603_v55 = vpop.eup %602 }
  0xc2   :  { %v107_v56 = vmul.f32 %v603_v55, %v48_v53  ;;  %v43_v53 = vld [vmem:[#allocation2 + $0x18] sm:$0xff] }
  0xc3   :  { %v44_v55 = vld [vmem:[#allocation2 + $0x38] sm:$0xff] }
  0xc4   :  { %v108_v58 = vmul.f32 %v107_v56, %v100_v45  ;;  %v114_v59 = vrot.slane %v107_v56, %v684_v54  ;;  %v589_v56 = vpack.c.bf16 %v44_v55, %v43_v53 }
  0xc6   :  { %v109_v60 = vsub.f32 %v49_v57, %v108_v58  ;;  %v116_v61 = vmul.f32 %v114_v59, %v77_v21  ;;  %v117_v62 = vmul.f32 %v114_v59, %v78_v25  ;;  %590 = vmatprep.subr.bf16.mxu1 %v589_v56  ;;  %v45_v57 = vld [vmem:[#allocation2 + $0x58] sm:$0xff] }
  0xc7   :  { %v46_v58 = vld [vmem:[#allocation2 + $0x78] sm:$0xff] }
  0xc8   :  { %v122_v63 = vrot.slane %v109_v60, %v684_v54  ;;  %v593_v59 = vpack.c.bf16 %v46_v58, %v45_v57  ;;  %v496_v60 = vld [vmem:[%s738_s2 + $0x6] ss:$0 sm:$0xff] }
  0xca   :  { %v124_v0 = vadd.f32 %v122_v63, %v116_v61  ;;  %v125_v1 = vadd.f32 %v122_v63, %v117_v62 }
  0xcc   :  { %540 = vmatprep.mubr.msk.f32.mxu0 %vm79_vm0, %v124_v0 }
  0xcd   :  { %541 = vmatmul.mubr.msk.f32.vlgmr.msra.gmra.mrb[0].mxu0 %vm79_vm0, %v125_v1 }
 0x1a0   :  { %v542_v9 = vpop.f32.mrb[0].mxu0 }
 0x1a1   :  { %v210_v10 = vadd.f32 %v542_v9, %v493_v8  ;;  %v204_v11 = vpop.f32.mrb[1].mxu0 }
 0x1a2   :  { %v205_v12 = vadd.f32 %v493_v8, %v204_v11 }
 0x1a3   :  { %v214_v13 = vmax.f32 %v210_v10, 0.0 }
 0x1a4   :  { %v213_v14 = vmax.f32 %v205_v12, 0.0 }
 0x1a5   :  { %v217_v15 = vsel %vm215_vm1, %v214_v13, 0.0  ;;  %v226_v16 = vmul.f32 %v214_v13, %v214_v13 }
 0x1a6   :  { %v216_v17 = vsel %vm215_vm1, %v213_v14, 0.0  ;;  %v225_v18 = vmul.f32 %v213_v14, %v213_v14 }
 0x1a7   :  { %v228_v19 = vsel %vm215_vm1, %v226_v16, 0.0  ;;  %v218_v20 = vadd.f32 %v217_v15, %v216_v17 }
 0x1a8   :  { %v227_v21 = vsel %vm215_vm1, %v225_v18, 0.0 }
 0x1a9   :  { %v219_v22 = vrot.slane %v218_v20, 4  ;;  %v229_v23 = vadd.f32 %v228_v19, %v227_v21 }
 0x1ab   :  { %v220_v24 = vadd.f32 %v219_v22, %v218_v20  ;;  %v230_v25 = vrot.slane %v229_v23, 4 }
 0x1ad   :  { %v221_v26 = vrot.slane %v220_v24, 2  ;;  %v231_v27 = vadd.f32 %v230_v25, %v229_v23 }
 0x1af   :  { %v222_v28 = vadd.f32 %v221_v26, %v220_v24  ;;  %v232_v29 = vrot.slane %v231_v27, 2 }
 0x1b1   :  { %v233_v30 = vadd.f32 %v232_v29, %v231_v27  ;;  %v223_v31 = vrot.slane %v222_v28, 1  ;;  %v54_v29 = vld [vmem:[%s738_s2 + $0x7] sm:$0x1] }
 0x1b3   :  { %v234_v32 = vrot.slane %v233_v30, 1  ;;  %v224_v33 = vadd.f32 %v223_v31, %v222_v28 }
 0x1b5   :  { %v235_v34 = vadd.f32 %v234_v32, %v233_v30  ;;  %v236_v35 = vmul.f32 0.0625, %v224_v33  ;;  %v55_v32 = vld [vmem:[%s738_s2 + $0x8] sm:$0x1] }
 0x1b7   :  { %v237_v36 = vmul.f32 0.0625, %v235_v34  ;;  %v238_v37 = vmul.f32 %v236_v35, %v236_v35 }
 0x1b9   :  { %v239_v38 = vsub.f32 %v237_v36, %v238_v37 }
 0x1bb   :  { %v240_v39 = vmax.f32 %v239_v38, 0.0 }
 0x1bd   :  { %v241_v40 = vadd.f32 1e-05, %v240_v39 }
 0x1bf   :  { %604 = vrsqrt.f32 %v241_v40 }
 0x1c9   :  { %v605_v42 = vpop.eup %604 }
 0x1ca   :  { %v243_v43 = vmul.f32 %v605_v42, %v51_v41  ;;  %v499_v41 = vld [vmem:[%s738_s2 + $0x9] ss:$0 sm:$0xff] }
 0x1cc   :  { %v244_v45 = vmul.f32 %v243_v43, %v236_v35  ;;  %v250_v46 = vrot.slane %v243_v43, %v684_v54 }
 0x1ce   :  { %v245_v47 = vsub.f32 %v52_v44, %v244_v45  ;;  %v252_v48 = vmul.f32 %v250_v46, %v213_v14  ;;  %v253_v49 = vmul.f32 %v250_v46, %v214_v13 }
 0x1d0   :  { %v258_v50 = vrot.slane %v245_v47, %v684_v54 }
 0x1d2   :  { %v260_v51 = vadd.f32 %v258_v50, %v252_v48  ;;  %v261_v52 = vadd.f32 %v258_v50, %v253_v49 }
 0x1d4   :  { %551 = vmatprep.mubr.msk.f32.mxu1 %vm215_vm1, %v260_v51 }
 0x1d5   :  { %552 = vmatmul.mubr.msk.f32.vlgmr.msra.gmra.mrb[0].mxu1 %vm215_vm1, %v261_v52 }
 0x1d6   :  { %592 = vmatpush3.bf16.msra.mxu1 %v589_v56 }
 0x1d7   :  { %594 = vmatprep.subr.bf16.mxu1 %v593_v59 }
 0x1da   :  { %596 = vmatpush3.bf16.msra.mxu1 %v593_v59 }
 0x2a8   :  { %v553_v61 = vpop.f32.mrb[0].mxu1 }
 0x2a9   :  { %v346_v62 = vadd.f32 %v553_v61, %v496_v60  ;;  %v340_v63 = vpop.f32.mrb[1].mxu1 }
 0x2aa   :  { %v341_v0 = vadd.f32 %v496_v60, %v340_v63 }
 0x2ab   :  { %v350_v1 = vmax.f32 %v346_v62, 0.0 }
 0x2ac   :  { %v349_v2 = vmax.f32 %v341_v0, 0.0 }
 0x2ad   :  { %v352_v3 = vsel %vm215_vm1, %v350_v1, 0.0  ;;  %v361_v4 = vmul.f32 %v350_v1, %v350_v1 }
 0x2ae   :  { %v351_v5 = vsel %vm215_vm1, %v349_v2, 0.0  ;;  %v360_v6 = vmul.f32 %v349_v2, %v349_v2 }
 0x2af   :  { %v363_v7 = vsel %vm215_vm1, %v361_v4, 0.0  ;;  %v353_v8 = vadd.f32 %v352_v3, %v351_v5 }
 0x2b0   :  { %v362_v9 = vsel %vm215_vm1, %v360_v6, 0.0 }
 0x2b1   :  { %v354_v10 = vrot.slane %v353_v8, 4  ;;  %v364_v11 = vadd.f32 %v363_v7, %v362_v9 }
 0x2b3   :  { %v355_v12 = vadd.f32 %v354_v10, %v353_v8  ;;  %v365_v13 = vrot.slane %v364_v11, 4 }
 0x2b5   :  { %v356_v14 = vrot.slane %v355_v12, 2  ;;  %v366_v15 = vadd.f32 %v365_v13, %v364_v11 }
 0x2b7   :  { %v357_v16 = vadd.f32 %v356_v14, %v355_v12  ;;  %v367_v17 = vrot.slane %v366_v15, 2 }
 0x2b9   :  { %v358_v18 = vrot.slane %v357_v16, 1  ;;  %v368_v19 = vadd.f32 %v367_v17, %v366_v15 }
 0x2bb   :  { %v359_v20 = vadd.f32 %v358_v18, %v357_v16  ;;  %v369_v21 = vrot.slane %v368_v19, 1 }
 0x2bd   :  { %v370_v22 = vadd.f32 %v369_v21, %v368_v19  ;;  %v371_v23 = vmul.f32 0.0625, %v359_v20 }
 0x2bf   :  { %v372_v24 = vmul.f32 0.0625, %v370_v22  ;;  %v373_v25 = vmul.f32 %v371_v23, %v371_v23 }
 0x2c1   :  { %v374_v26 = vsub.f32 %v372_v24, %v373_v25 }
 0x2c3   :  { %v375_v27 = vmax.f32 %v374_v26, 0.0 }
 0x2c5   :  { %v376_v28 = vadd.f32 1e-05, %v375_v27 }
 0x2c7   :  { %606 = vrsqrt.f32 %v376_v28 }
 0x2d1   :  { %v607_v30 = vpop.eup %606 }
 0x2d2   :  { %v378_v31 = vmul.f32 %v607_v30, %v54_v29 }
 0x2d4   :  { %v379_v33 = vmul.f32 %v378_v31, %v371_v23  ;;  %v385_v34 = vrot.slane %v378_v31, %v684_v54 }
 0x2d6   :  { %v387_v35 = vmul.f32 %v385_v34, %v349_v2  ;;  %v388_v36 = vmul.f32 %v385_v34, %v350_v1  ;;  %v380_v37 = vsub.f32 %v55_v32, %v379_v33 }
 0x2d8   :  { %v393_v38 = vrot.slane %v380_v37, %v684_v54 }
 0x2da   :  { %v395_v39 = vadd.f32 %v393_v38, %v387_v35  ;;  %v396_v40 = vadd.f32 %v393_v38, %v388_v36 }
 0x2dc   :  { %562 = vmatprep.mubr.msk.f32.mxu1 %vm215_vm1, %v395_v39 }
 0x2dd   :  { %563 = vmatmul.mubr.msk.f32.vlgmr.msra.gmra.mrb[2].mxu1 %vm215_vm1, %v396_v40 }
 0x3b0   :  { %v564_v42 = vpop.f32.mrb[2].mxu1 }
 0x3b1   :  { %v481_v43 = vadd.f32 %v564_v42, %v499_v41  ;;  %v475_v44 = vpop.f32.mrb[3].mxu1 }
 0x3b2   :  { %v476_v45 = vadd.f32 %v499_v41, %v475_v44 }
 0x3b3   :  { %486 = vst.msk [vmem:[%s739_s3 + $0x8] sm:$0xff] %vm484_vm2, %v481_v43 }
 0x3b4   :  { %485 = vst.msk [vmem:[%s739_s3] sm:$0xff] %vm484_vm2, %v476_v45 }
 0x3b5   :  { %491 = vsyncpa [#allocation3], 1 }

</bundles_post_ra>
